<compile_context>
chip_gen: v7x
topology: tpu7x:2x2x1
jax: 0.10.0
libtpu: 0.0.40
codegen_flags: <defaults>
</compile_context>

<pallas_src>
import jax
import jax.numpy as jnp
from jax import lax
from jax.experimental import pallas as pl
from jax.experimental.pallas import tpu as pltpu


def _round_up(x, m):
    return max(m, -(-x // m) * m)


def baseline_dnn_kernel(ids_ref, len_ref,                         # (Bp,S) int32, (Bp,1) f32
                        emb_ref, w1_ref, b1_ref, w2_ref, b2_ref,  # zero-padded params
                        out_ref):                                  # (Bp, Cp) f32
    ids = ids_ref[...]                                  # (Bp, S) int32
    Bp, S = ids.shape
    Vp = emb_ref.shape[0]

    # counts[b, v] = number of times token v appears in row b (pads included, exactly
    # like torch.sum(embeddings, 1) before dividing by the true length).
    vocab = lax.broadcasted_iota(jnp.int32, (Bp, Vp), 1)          # hoisted out of the loop
    counts = jnp.zeros((Bp, Vp), jnp.float32)
    for s in range(S):                                            # static S -> fully unrolled
        counts = counts + (ids[:, s:s + 1] == vocab).astype(jnp.float32)

    # sum of word embeddings == counts @ emb_table : one MXU matmul for the whole batch.
    rep = jnp.dot(counts, emb_ref[...], preferred_element_type=jnp.float32)  # (Bp, Dp)
    rep = rep / len_ref[...]                                      # divide by true length

    h = jnp.dot(rep, w1_ref[...], preferred_element_type=jnp.float32) + b1_ref[...]
    h = jnp.maximum(h, 0.0)                                       # ReLU, (Bp, Hp)

    out_ref[...] = (jnp.dot(h, w2_ref[...], preferred_element_type=jnp.float32)
                    + b2_ref[...])                                # dense (Bp, Cp) store


def baseline_dnn_forward(x_ids, lengths, emb_table, w1, b1, w2, b2):
    B, S = x_ids.shape
    V, D = emb_table.shape
    H = w1.shape[1]
    C = w2.shape[1]

    Bp = _round_up(B, 8)        # sublane-aligned batch
    Vp = _round_up(V, 128)      # lane dim of counts / sublane dim of emb
    Dp = _round_up(D, 128)      # lane dim of rep / contraction dim of fc
    Hp = _round_up(H, 128)      # lane-dense hidden
    Cp = _round_up(C, 128)      # lane-dense output -> unmasked stores

    # zero-pad params / inputs (padded vocab rows, emb dims, hidden units and classes
    # contribute exactly 0 through every dot product)
    ids_p = jnp.zeros((Bp, S), jnp.int32).at[:B].set(x_ids.astype(jnp.int32))
    len_p = jnp.ones((Bp, 1), jnp.float32).at[:B, 0].set(lengths.astype(jnp.float32))
    emb_p = jnp.zeros((Vp, Dp), jnp.float32).at[:V, :D].set(emb_table.astype(jnp.float32))
    w1_p = jnp.zeros((Dp, Hp), jnp.float32).at[:D, :H].set(w1.astype(jnp.float32))
    b1_p = jnp.zeros((1, Hp), jnp.float32).at[0, :H].set(b1.astype(jnp.float32))
    w2_p = jnp.zeros((Hp, Cp), jnp.float32).at[:H, :C].set(w2.astype(jnp.float32))
    b2_p = jnp.zeros((1, Cp), jnp.float32).at[0, :C].set(b2.astype(jnp.float32))

    out = pl.pallas_call(
        baseline_dnn_kernel,
        out_shape=jax.ShapeDtypeStruct((Bp, Cp), jnp.float32),
        in_specs=[pl.BlockSpec(memory_space=pltpu.MemorySpace.VMEM)] * 7,
        out_specs=pl.BlockSpec(memory_space=pltpu.MemorySpace.VMEM),
    )(ids_p, len_p, emb_p, w1_p, b1_p, w2_p, b2_p)

    return out[:B, :C]


def baseline_dnn_ref(x_ids, lengths, emb_table, w1, b1, w2, b2):
    emb = emb_table[x_ids]                                        # (B, S, D)
    rep = emb.sum(axis=1) / lengths[:, None].astype(jnp.float32)
    h = jax.nn.relu(rep @ w1 + b1)
    return h @ w2 + b2


if __name__ == "__main__":
    # small shapes consistent with the module
    B, S = 2, 8          # batch, sequence length
    V, D = 64, 32        # vocab size, embedding dim
    H = 16               # fixed hidden size from nn.Linear(emb_dim, 16)
    C = 3                # output_size (number of classes)

    key = jax.random.PRNGKey(0)
    k_emb, k_w1, k_b1, k_w2, k_b2, k_ids, k_len = jax.random.split(key, 7)

    emb_table = jax.random.normal(k_emb, (V, D), jnp.float32) * 0.1
    w1 = jax.random.normal(k_w1, (D, H), jnp.float32) * (1.0 / jnp.sqrt(D))
    b1 = jax.random.normal(k_b1, (H,), jnp.float32) * 0.01
    w2 = jax.random.normal(k_w2, (H, C), jnp.float32) * (1.0 / jnp.sqrt(H))
    b2 = jax.random.normal(k_b2, (C,), jnp.float32) * 0.01

    x_ids = jax.random.randint(k_ids, (B, S), 0, V, jnp.int32)
    lengths = jax.random.randint(k_len, (B,), 1, S + 1, jnp.int32)

    logits = baseline_dnn_forward(x_ids, lengths, emb_table, w1, b1, w2, b2)
    logits = jax.block_until_ready(logits)

    ref = baseline_dnn_ref(x_ids, lengths, emb_table, w1, b1, w2, b2)
    assert logits.shape == (B, C)
    # tolerance covers MXU default-precision matmul + summation-order differences
    # vs the exact-gather reference path
    assert jnp.allclose(logits, ref, atol=1e-2, rtol=1e-2), (logits, ref)

    print("KERNEL_OK")
</pallas_src>

<mosaic_0001>
module attributes {stable_mosaic.version = 11 : i64} {
  func.func @baseline_dnn_kernel(%arg0: memref<8x8xi32, #tpu.memory_space<vmem>>, %arg1: memref<8x1xf32, #tpu.memory_space<vmem>>, %arg2: memref<128x128xf32, #tpu.memory_space<vmem>>, %arg3: memref<128x128xf32, #tpu.memory_space<vmem>>, %arg4: memref<1x128xf32, #tpu.memory_space<vmem>>, %arg5: memref<128x128xf32, #tpu.memory_space<vmem>>, %arg6: memref<1x128xf32, #tpu.memory_space<vmem>>, %arg7: memref<8x128xf32, #tpu.memory_space<vmem>>) attributes {dimension_semantics = [], scalar_prefetch = 0 : i64, scratch_operands = 0 : i64, tpu.core_type = #tpu.core_type<tc>} {
    %c0 = arith.constant 0 : index
    %c0_0 = arith.constant 0 : index
    %0 = vector.load %arg0[%c0, %c0_0] : memref<8x8xi32, #tpu.memory_space<vmem>>, vector<8x8xi32>
    %1 = tpu.iota {dimensions = array<i32: 1>} : vector<8x128xi32>
    %cst = arith.constant 0.000000e+00 : f32
    %2 = vector.broadcast %cst : f32 to vector<8x128xf32>
    %3 = vector.extract_strided_slice %0 {offsets = [0, 0], sizes = [8, 1], strides = [1, 1]} : vector<8x8xi32> to vector<8x1xi32>
    %4 = vector.broadcast %3 : vector<8x1xi32> to vector<8x128xi32>
    %5 = arith.cmpi eq, %4, %1 : vector<8x128xi32>
    %6 = arith.extui %5 : vector<8x128xi1> to vector<8x128xi32>
    %7 = arith.sitofp %6 : vector<8x128xi32> to vector<8x128xf32>
    %8 = arith.addf %2, %7 : vector<8x128xf32>
    %9 = vector.extract_strided_slice %0 {offsets = [0, 1], sizes = [8, 1], strides = [1, 1]} : vector<8x8xi32> to vector<8x1xi32>
    %10 = vector.broadcast %9 : vector<8x1xi32> to vector<8x128xi32>
    %11 = arith.cmpi eq, %10, %1 : vector<8x128xi32>
    %12 = arith.extui %11 : vector<8x128xi1> to vector<8x128xi32>
    %13 = arith.sitofp %12 : vector<8x128xi32> to vector<8x128xf32>
    %14 = arith.addf %8, %13 : vector<8x128xf32>
    %15 = vector.extract_strided_slice %0 {offsets = [0, 2], sizes = [8, 1], strides = [1, 1]} : vector<8x8xi32> to vector<8x1xi32>
    %16 = vector.broadcast %15 : vector<8x1xi32> to vector<8x128xi32>
    %17 = arith.cmpi eq, %16, %1 : vector<8x128xi32>
    %18 = arith.extui %17 : vector<8x128xi1> to vector<8x128xi32>
    %19 = arith.sitofp %18 : vector<8x128xi32> to vector<8x128xf32>
    %20 = arith.addf %14, %19 : vector<8x128xf32>
    %21 = vector.extract_strided_slice %0 {offsets = [0, 3], sizes = [8, 1], strides = [1, 1]} : vector<8x8xi32> to vector<8x1xi32>
    %22 = vector.broadcast %21 : vector<8x1xi32> to vector<8x128xi32>
    %23 = arith.cmpi eq, %22, %1 : vector<8x128xi32>
    %24 = arith.extui %23 : vector<8x128xi1> to vector<8x128xi32>
    %25 = arith.sitofp %24 : vector<8x128xi32> to vector<8x128xf32>
    %26 = arith.addf %20, %25 : vector<8x128xf32>
    %27 = vector.extract_strided_slice %0 {offsets = [0, 4], sizes = [8, 1], strides = [1, 1]} : vector<8x8xi32> to vector<8x1xi32>
    %28 = vector.broadcast %27 : vector<8x1xi32> to vector<8x128xi32>
    %29 = arith.cmpi eq, %28, %1 : vector<8x128xi32>
    %30 = arith.extui %29 : vector<8x128xi1> to vector<8x128xi32>
    %31 = arith.sitofp %30 : vector<8x128xi32> to vector<8x128xf32>
    %32 = arith.addf %26, %31 : vector<8x128xf32>
    %33 = vector.extract_strided_slice %0 {offsets = [0, 5], sizes = [8, 1], strides = [1, 1]} : vector<8x8xi32> to vector<8x1xi32>
    %34 = vector.broadcast %33 : vector<8x1xi32> to vector<8x128xi32>
    %35 = arith.cmpi eq, %34, %1 : vector<8x128xi32>
    %36 = arith.extui %35 : vector<8x128xi1> to vector<8x128xi32>
    %37 = arith.sitofp %36 : vector<8x128xi32> to vector<8x128xf32>
    %38 = arith.addf %32, %37 : vector<8x128xf32>
    %39 = vector.extract_strided_slice %0 {offsets = [0, 6], sizes = [8, 1], strides = [1, 1]} : vector<8x8xi32> to vector<8x1xi32>
    %40 = vector.broadcast %39 : vector<8x1xi32> to vector<8x128xi32>
    %41 = arith.cmpi eq, %40, %1 : vector<8x128xi32>
    %42 = arith.extui %41 : vector<8x128xi1> to vector<8x128xi32>
    %43 = arith.sitofp %42 : vector<8x128xi32> to vector<8x128xf32>
    %44 = arith.addf %38, %43 : vector<8x128xf32>
    %45 = vector.extract_strided_slice %0 {offsets = [0, 7], sizes = [8, 1], strides = [1, 1]} : vector<8x8xi32> to vector<8x1xi32>
    %46 = vector.broadcast %45 : vector<8x1xi32> to vector<8x128xi32>
    %47 = arith.cmpi eq, %46, %1 : vector<8x128xi32>
    %48 = arith.extui %47 : vector<8x128xi1> to vector<8x128xi32>
    %49 = arith.sitofp %48 : vector<8x128xi32> to vector<8x128xf32>
    %50 = arith.addf %44, %49 : vector<8x128xf32>
    %c0_1 = arith.constant 0 : index
    %c0_2 = arith.constant 0 : index
    %51 = vector.load %arg2[%c0_1, %c0_2] : memref<128x128xf32, #tpu.memory_space<vmem>>, vector<128x128xf32>
    %cst_3 = arith.constant dense<0.000000e+00> : vector<8x128xf32>
    %52 = tpu.matmul %50, %51, %cst_3 {dimension_numbers = #tpu.dot_dimension_numbers<[1], [0], [0], [1], [0, 0, 1, 1], [], []>} : vector<8x128xf32>, vector<128x128xf32>, vector<8x128xf32> -> vector<8x128xf32>
    %c0_4 = arith.constant 0 : index
    %c0_5 = arith.constant 0 : index
    %53 = vector.load %arg1[%c0_4, %c0_5] : memref<8x1xf32, #tpu.memory_space<vmem>>, vector<8x1xf32>
    %54 = vector.broadcast %53 : vector<8x1xf32> to vector<8x128xf32>
    %55 = arith.divf %52, %54 : vector<8x128xf32>
    %c0_6 = arith.constant 0 : index
    %c0_7 = arith.constant 0 : index
    %56 = vector.load %arg3[%c0_6, %c0_7] : memref<128x128xf32, #tpu.memory_space<vmem>>, vector<128x128xf32>
    %cst_8 = arith.constant dense<0.000000e+00> : vector<8x128xf32>
    %57 = tpu.matmul %55, %56, %cst_8 {dimension_numbers = #tpu.dot_dimension_numbers<[1], [0], [0], [1], [0, 0, 1, 1], [], []>} : vector<8x128xf32>, vector<128x128xf32>, vector<8x128xf32> -> vector<8x128xf32>
    %c0_9 = arith.constant 0 : index
    %c0_10 = arith.constant 0 : index
    %58 = vector.load %arg4[%c0_9, %c0_10] : memref<1x128xf32, #tpu.memory_space<vmem>>, vector<1x128xf32>
    %59 = vector.broadcast %58 : vector<1x128xf32> to vector<8x128xf32>
    %60 = arith.addf %57, %59 : vector<8x128xf32>
    %cst_11 = arith.constant 0.000000e+00 : f32
    %61 = vector.broadcast %cst_11 : f32 to vector<8x128xf32>
    %62 = arith.maximumf %60, %61 : vector<8x128xf32>
    %c0_12 = arith.constant 0 : index
    %c0_13 = arith.constant 0 : index
    %63 = vector.load %arg5[%c0_12, %c0_13] : memref<128x128xf32, #tpu.memory_space<vmem>>, vector<128x128xf32>
    %cst_14 = arith.constant dense<0.000000e+00> : vector<8x128xf32>
    %64 = tpu.matmul %62, %63, %cst_14 {dimension_numbers = #tpu.dot_dimension_numbers<[1], [0], [0], [1], [0, 0, 1, 1], [], []>} : vector<8x128xf32>, vector<128x128xf32>, vector<8x128xf32> -> vector<8x128xf32>
    %c0_15 = arith.constant 0 : index
    %c0_16 = arith.constant 0 : index
    %65 = vector.load %arg6[%c0_15, %c0_16] : memref<1x128xf32, #tpu.memory_space<vmem>>, vector<1x128xf32>
    %66 = vector.broadcast %65 : vector<1x128xf32> to vector<8x128xf32>
    %67 = arith.addf %64, %66 : vector<8x128xf32>
    %c0_17 = arith.constant 0 : index
    %c0_18 = arith.constant 0 : index
    %68 = vector.load %arg7[%c0_17, %c0_18] : memref<8x128xf32, #tpu.memory_space<vmem>>, vector<8x128xf32>
    tpu.vector_store %arg7[%c0_17, %c0_18], %67 {strides = array<i32>} : memref<8x128xf32, #tpu.memory_space<vmem>>, vector<8x128xf32>,
    return
  }
}

</mosaic_0001>

<bundles_post_ra>
// kernel: tpu_custom_call.1
= control target key start
LH: loop header
LB: loop body
LE: loop exit
PB: predicated region body
PF: predicated region fallthrough
CT: control target
= control target key end

     0   :  { %12 = vsyncpa [#allocation3], 0  ;;  %s956_s0 = inlined_call_operand.vmem [shape: s32[8,8], index: 0, kind: input, shape index: {}]   ;;  %s957_s1 = inlined_call_operand.vmem [shape: f32[8,1], index: 1, kind: input, shape index: {}]   ;;  %s958_s2 = inlined_call_operand.hbm [shape: f32[128,128], index: 2, kind: input, shape index: {}]   ;;  %s959_s3 = inlined_call_operand.hbm [shape: f32[128,128], index: 3, kind: input, shape index: {}]   ;;  %s960_s4 = inlined_call_operand.vmem [shape: f32[1,128], index: 4, kind: input, shape index: {}]   ;;  %s961_s5 = inlined_call_operand.hbm [shape: f32[128,128], index: 5, kind: input, shape index: {}]   ;;  %s962_s6 = inlined_call_operand.vmem [shape: f32[1,128], index: 6, kind: input, shape index: {}]   ;;  %s963_s7 = inlined_call_operand.hbm [shape: f32[8,128], index: 7, kind: output, shape index: {}]  }
   0x1   :  { %13 = vsyncpa [#allocation6], 0 }
   0x2   :  { %14 = vsyncpa [#allocation4], 0  ;;  %s785_s24 = smov [#allocation5]   ;;  %s786_s26 = smov [#allocation2]  }
   0x3   :  { %s36_s25 = sshll.u32 %s785_s24, 4  ;;  %s24_s27 = sshll.u32 %s786_s26, 4  ;;  %s37_s25 = int_to_ptr.vmem [resolvable:$true] %s36_s25  ;;  %s842_s27 = int_to_ptr.vmem [resolvable:$true] %s24_s27 }
   0x4   :  { %s691_s30 = scalar_lea.hbm %s959_s3, 2048 }
   0x5   :  { %p692_p0 = scmp.ne.s32.totalorder %s959_s3, %s691_s30  ;;  %p695_p1 = scmp.lt.u32.totalorder %s691_s30, %s959_s3 }
   0x7   :  { %p697_p2 = pnand %p695_p1, %p692_p0 }
   0x9   :  { %700 = shalt.err (!%p697_p2)
}
   0xa   :  { %s701_s12 = scalar_lea.vmem %s37_s25, 2048  ;;  %p706_p4 = scmp.lt.s32.totalorder %s37_s25, %s37_s25 }
   0xb   :  { %p702_p3 = scmp.ne.s32.totalorder %s37_s25, %s701_s12  ;;  %p707_p5 = scmp.lt.s32.totalorder %s701_s12, %s701_s12 }
   0xd   :  { %p708_p6 = por %p707_p5, %p706_p4 }
   0xf   :  { %p709_p7 = pnand %p708_p6, %p702_p3 }
  0x11   :  { %712 = shalt.err (!%p709_p7)
}
  0x12   :  { %s787_s13 = smov 128   ;;  %s788_s14 = smov 8  }
  0x13   :  { %42 = dma.hbm_to_vmem [thread:$0]  %s959_s3, 2048, %s37_s25, [#allocation6], %s787_s13, %s787_s13, %s788_s14  }
  0x14   :  { %s713_s19 = scalar_lea.hbm %s958_s2, 2048 }
  0x15   :  { %p714_p8 = scmp.ne.s32.totalorder %s958_s2, %s713_s19  ;;  %p717_p9 = scmp.lt.u32.totalorder %s713_s19, %s958_s2 }
  0x17   :  { %p719_p10 = pnand %p717_p9, %p714_p8 }
  0x19   :  { %722 = shalt.err (!%p719_p10)
}
  0x1a   :  { %s723_s24 = scalar_lea.vmem %s842_s27, 2048  ;;  %p728_p12 = scmp.lt.s32.totalorder %s842_s27, %s842_s27 }
  0x1b   :  { %p724_p11 = scmp.ne.s32.totalorder %s842_s27, %s723_s24  ;;  %p729_p13 = scmp.lt.s32.totalorder %s723_s24, %s723_s24 }
  0x1d   :  { %p730_p0 = por %p729_p13, %p728_p12 }
  0x1f   :  { %p731_p1 = pnand %p730_p0, %p724_p11 }
  0x21   :  { %734 = shalt.err (!%p731_p1)
}
  0x22   :  { %30 = dma.hbm_to_vmem [thread:$0]  %s958_s2, 2048, %s842_s27, [#allocation3], %s787_s13, %s787_s13, %s788_s14  }
  0x23   :  { %s789_s26 = smov [#allocation7]   ;;  %s735_s8 = scalar_lea.hbm %s961_s5, 2048 }
  0x24   :  { %s50_s28 = sshll.u32 %s789_s26, 4  ;;  %p736_p2 = scmp.ne.s32.totalorder %s961_s5, %s735_s8  ;;  %s51_s28 = int_to_ptr.vmem [resolvable:$true] %s50_s28 }
  0x25   :  { %p739_p3 = scmp.lt.u32.totalorder %s735_s8, %s961_s5 }
  0x27   :  { %p741_p4 = pnand %p739_p3, %p736_p2 }
  0x29   :  { %744 = shalt.err (!%p741_p4)
}
  0x2a   :  { %s745_s15 = scalar_lea.vmem %s51_s28, 2048  ;;  %p750_p6 = scmp.lt.s32.totalorder %s51_s28, %s51_s28 }
  0x2b   :  { %p746_p5 = scmp.ne.s32.totalorder %s51_s28, %s745_s15  ;;  %p751_p7 = scmp.lt.s32.totalorder %s745_s15, %s745_s15 }
  0x2d   :  { %p752_p8 = por %p751_p7, %p750_p6 }
  0x2f   :  { %p753_p9 = pnand %p752_p8, %p746_p5 }
  0x31   :  { %756 = shalt.err (!%p753_p9)
}
  0x32   :  { %56 = dma.hbm_to_vmem [thread:$0]  %s961_s5, 2048, %s51_s28, [#allocation6], %s787_s13, %s787_s13, %s788_s14  }
  0x33   :  { %779 = dma.done.wait [#allocation3], 2048  }
  0x34   :  { %780 = vsyncadd [#allocation3], 4294965248 }
  0x35   :  { %781 = dma.done.wait [#allocation6], 4096  }
  0x36   :  { %782 = vsyncadd [#allocation6], 4294963200  ;;  %v790_v0 = vmov 2   ;;  %v791_v1 = vmov 0   ;;  %v792_v2 = vmov 0.0|0.0   ;;  %v68_v3 = vld [vmem:[%s956_s0] sm:$0xff]  ;;  %v69_v57 = vlaneseq }
  0x37   :  { %682 = vset.pattern.permute.xlu1 %v790_v0  ;;  %680 = vset.pattern.permute.xlu0 %v791_v1  ;;  %v127_v4 = vld [vmem:[#allocation2] sm:$0xff]  ;;  %v128_v5 = vld [vmem:[#allocation2 + $0x8] sm:$0xff]  ;;  %v129_v7 = vld [vmem:[#allocation2 + $0x10] sm:$0xff]  ;;  %v793_v10 = vmov 3   ;;  %v794_v11 = vmov 1   ;;  %v795_v17 = vmov 4  }
  0x38   :  { %591 = vmatprep.subr.bf16.mxu0 %v792_v2  ;;  %615 = vmatprep.subr.bf16.mxu1 %v792_v2  ;;  %v592_v6 = vpack.c.bf16 %v128_v5, %v127_v4  ;;  %v130_v8 = vld [vmem:[#allocation2 + $0x18] sm:$0xff]  ;;  %v131_v12 = vld [vmem:[#allocation2 + $0x20] sm:$0xff]  ;;  %v132_v13 = vld [vmem:[#allocation2 + $0x28] sm:$0xff]  ;;  %v796_v18 = vmov 5   ;;  %v797_v22 = vmov 6   ;;  %v798_v26 = vmov 7  }
  0x39   :  { %86 = vperm.xlu1 %682, %v68_v3   ;;  %72 = vperm.xlu0 %680, %v68_v3   ;;  %v595_v9 = vpack.c.bf16 %v130_v8, %v129_v7  ;;  %v598_v14 = vpack.c.bf16 %v132_v13, %v131_v12  ;;  %v133_v15 = vld [vmem:[#allocation2 + $0x30] sm:$0xff]  ;;  %v134_v16 = vld [vmem:[#allocation2 + $0x38] sm:$0xff]  ;;  %v135_v20 = vld [vmem:[#allocation2 + $0x40] sm:$0xff]  ;;  %vm799_vm0 = vmmov 0   ;;  %v800_v33 = vmov 0.0   ;;  %s801_s19 = smov [#allocation8]  }
  0x3a   :  { %593 = vmatpush3.bf16.msra.mxu0 %v592_v6  ;;  %v601_v19 = vpack.c.bf16 %v134_v16, %v133_v15  ;;  %v136_v21 = vld [vmem:[#allocation2 + $0x48] sm:$0xff]  ;;  %v137_v24 = vld [vmem:[#allocation2 + $0x50] sm:$0xff]  ;;  %v138_v25 = vld [vmem:[#allocation2 + $0x58] sm:$0xff]  ;;  %518 = vmatprep.mubr.msk.f32.mxu0 %vm799_vm0, %v800_v33  ;;  %v70_v60 = vand.u32 127, %v69_v57  ;;  %s415_s20 = sshll.u32 %s801_s19, 4  ;;  %s416_s20 = int_to_ptr.vmem [resolvable:$true] %s415_s20 }
  0x3b   :  { %594 = vmatprep.subr.bf16.mxu0 %v792_v2  ;;  %v604_v23 = vpack.c.bf16 %v136_v21, %v135_v20  ;;  %v607_v27 = vpack.c.bf16 %v138_v25, %v137_v24  ;;  %v139_v28 = vld [vmem:[#allocation2 + $0x60] sm:$0xff]  ;;  %v140_v29 = vld [vmem:[#allocation2 + $0x68] sm:$0xff]  ;;  %v141_v31 = vld [vmem:[#allocation2 + $0x70] sm:$0xff]  ;;  %553 = vmatprep.mubr.msk.f32.mxu1 %vm799_vm0, %v800_v33  ;;  %s757_s21 = scalar_lea.vmem %s416_s20, 128  ;;  %p762_p11 = scmp.lt.s32.totalorder %s416_s20, %s416_s20 }
  0x3c   :  { %v610_v30 = vpack.c.bf16 %v140_v29, %v139_v28  ;;  %v142_v32 = vld [vmem:[#allocation2 + $0x78] sm:$0xff]  ;;  %v213_v34 = vld [vmem:[%s957_s1] sm:$0xff]  ;;  %v222_v36 = vld [vmem:[#allocation5 + $0x8] sm:$0xff]  ;;  %p758_p10 = scmp.ne.s32.totalorder %s416_s20, %s757_s21  ;;  %p763_p12 = scmp.lt.s32.totalorder %s757_s21, %s757_s21 }
  0x3d   :  { %683 = vset.pattern.permute.xlu1 %v793_v10  ;;  %681 = vset.pattern.permute.xlu0 %v794_v11  ;;  %v221_v35 = vld [vmem:[#allocation5] sm:$0xff]  ;;  %v223_v38 = vld [vmem:[#allocation5 + $0x10] sm:$0xff]  ;;  %v224_v39 = vld [vmem:[#allocation5 + $0x18] sm:$0xff]  ;;  %v613_v40 = vpack.c.bf16 %v142_v32, %v141_v31 }
  0x3e   :  { %93 = vperm.xlu1 %683, %v68_v3   ;;  %79 = vperm.xlu0 %681, %v68_v3   ;;  %v616_v37 = vpack.c.bf16 %v222_v36, %v221_v35  ;;  %v619_v41 = vpack.c.bf16 %v224_v39, %v223_v38  ;;  %v225_v42 = vld [vmem:[#allocation5 + $0x20] sm:$0xff]  ;;  %v226_v43 = vld [vmem:[#allocation5 + $0x28] sm:$0xff]  ;;  %v227_v45 = vld [vmem:[#allocation5 + $0x30] sm:$0xff]  ;;  %p764_p13 = por %p763_p12, %p762_p11 }
  0x3f   :  { %596 = vmatpush3.bf16.msra.mxu0 %v595_v9  ;;  %v622_v44 = vpack.c.bf16 %v226_v43, %v225_v42  ;;  %v228_v46 = vld [vmem:[#allocation5 + $0x38] sm:$0xff]  ;;  %v229_v48 = vld [vmem:[#allocation5 + $0x40] sm:$0xff]  ;;  %v230_v49 = vld [vmem:[#allocation5 + $0x48] sm:$0xff] }
  0x40   :  { %597 = vmatprep.subr.bf16.mxu0 %v792_v2  ;;  %617 = vmatpush3.bf16.msra.mxu1 %v616_v37  ;;  %v625_v47 = vpack.c.bf16 %v228_v46, %v227_v45  ;;  %v628_v50 = vpack.c.bf16 %v230_v49, %v229_v48  ;;  %v231_v51 = vld [vmem:[#allocation5 + $0x50] sm:$0xff]  ;;  %v232_v52 = vld [vmem:[#allocation5 + $0x58] sm:$0xff]  ;;  %v233_v54 = vld [vmem:[#allocation5 + $0x60] sm:$0xff]  ;;  %p765_p0 = pnand %p764_p13, %p758_p10 }
  0x41   :  { %618 = vmatprep.subr.bf16.mxu1 %v792_v2  ;;  %v631_v53 = vpack.c.bf16 %v232_v52, %v231_v51  ;;  %v234_v55 = vld [vmem:[#allocation5 + $0x68] sm:$0xff]  ;;  %v236_v20 = vld [vmem:[#allocation5 + $0x78] sm:$0xff]  ;;  %v317_v24 = vld [vmem:[#allocation7 + $0x10] sm:$0xff] }
  0x42   :  { %684 = vset.pattern.permute.xlu1 %v795_v17  ;;  %685 = vset.pattern.permute.xlu0 %v796_v18  ;;  %v634_v56 = vpack.c.bf16 %v234_v55, %v233_v54  ;;  %v319_v28 = vld [vmem:[#allocation7 + $0x20] sm:$0xff]  ;;  %v320_v29 = vld [vmem:[#allocation7 + $0x28] sm:$0xff]  ;;  %v321_v31 = vld [vmem:[#allocation7 + $0x30] sm:$0xff] }
  0x43   :  { %100 = vperm.xlu1 %684, %v68_v3   ;;  %107 = vperm.xlu0 %685, %v68_v3   ;;  %v322_v32 = vld [vmem:[#allocation7 + $0x38] sm:$0xff]  ;;  %v324_v35 = vld [vmem:[#allocation7 + $0x48] sm:$0xff]  ;;  %v325_v37 = vld [vmem:[#allocation7 + $0x50] sm:$0xff] }
  0x44   :  { %599 = vmatpush3.bf16.msra.mxu0 %v598_v14  ;;  %620 = vmatpush3.bf16.msra.mxu1 %v619_v41  ;;  %v326_v38 = vld [vmem:[#allocation7 + $0x58] sm:$0xff]  ;;  %v328_v41 = vld [vmem:[#allocation7 + $0x68] sm:$0xff]  ;;  %v329_v48 = vld [vmem:[#allocation7 + $0x70] sm:$0xff] }
  0x45   :  { %600 = vmatprep.subr.bf16.mxu0 %v792_v2  ;;  %621 = vmatprep.subr.bf16.mxu1 %v792_v2  ;;  %v655_v39 = vpack.c.bf16 %v326_v38, %v325_v37  ;;  %v330_v49 = vld [vmem:[#allocation7 + $0x78] sm:$0xff]  ;;  %v433_v51 = vld [vmem:[%s960_s4] ss:$0 sm:$0xff] }
  0x47   :  { %686 = vset.pattern.permute.xlu1 %v797_v22  ;;  %688 = vset.pattern.permute.xlu0 %v791_v1  ;;  %v315_v22 = vld [vmem:[#allocation7] sm:$0xff] }
  0x48   :  { %114 = vperm.xlu1 %686, %v68_v3   ;;  %602 = vmatpush3.bf16.msra.mxu0 %v601_v19  ;;  %v235_v19 = vld [vmem:[#allocation5 + $0x70] sm:$0xff] }
  0x49   :  { %603 = vmatprep.subr.bf16.mxu0 %v792_v2  ;;  %216 = vperm.xlu0 %688, %v213_v34   ;;  %v637_v21 = vpack.c.bf16 %v236_v20, %v235_v19  ;;  %v323_v34 = vld [vmem:[#allocation7 + $0x40] sm:$0xff] }
  0x4a   :  { %623 = vmatpush3.bf16.msra.mxu1 %v622_v44  ;;  %v652_v36 = vpack.c.bf16 %v324_v35, %v323_v34 }
  0x4b   :  { %624 = vmatprep.subr.bf16.mxu1 %v792_v2 }
  0x4c   :  { %687 = vset.pattern.permute.xlu1 %v798_v26  ;;  %605 = vmatpush3.bf16.msra.mxu0 %v604_v23  ;;  %v316_v23 = vld [vmem:[#allocation7 + $0x8] sm:$0xff]  ;;  %v318_v26 = vld [vmem:[#allocation7 + $0x18] sm:$0xff] }
  0x4d   :  { %121 = vperm.xlu1 %687, %v68_v3   ;;  %606 = vmatprep.subr.bf16.mxu0 %v792_v2  ;;  %v640_v25 = vpack.c.bf16 %v316_v23, %v315_v22 }
  0x4e   :  { %626 = vmatpush3.bf16.msra.mxu1 %v625_v47 }
  0x4f   :  { %627 = vmatprep.subr.bf16.mxu1 %v792_v2 }
  0x50   :  { %608 = vmatpush3.bf16.msra.mxu0 %v607_v27  ;;  %v643_v27 = vpack.c.bf16 %v318_v26, %v317_v24 }
  0x51   :  { %609 = vmatprep.subr.bf16.mxu0 %v792_v2 }
  0x52   :  { %629 = vmatpush3.bf16.msra.mxu1 %v628_v50  ;;  %v661_v50 = vpack.c.bf16 %v330_v49, %v329_v48 }
  0x53   :  { %630 = vmatprep.subr.bf16.mxu1 %v792_v2 }
  0x54   :  { %611 = vmatpush3.bf16.msra.mxu0 %v610_v30  ;;  %v646_v30 = vpack.c.bf16 %v320_v29, %v319_v28 }
  0x55   :  { %612 = vmatprep.subr.bf16.mxu0 %v792_v2 }
  0x56   :  { %632 = vmatpush3.bf16.msra.mxu1 %v631_v53 }
  0x57   :  { %633 = vmatprep.subr.bf16.mxu1 %v792_v2 }
  0x58   :  { %614 = vmatpush3.bf16.msra.mxu0 %v613_v40  ;;  %v327_v40 = vld [vmem:[#allocation7 + $0x60] sm:$0xff] }
  0x59   :  { %639 = vmatprep.subr.bf16.mxu0 %v792_v2  ;;  %v658_v42 = vpack.c.bf16 %v328_v41, %v327_v40 }
  0x5a   :  { %635 = vmatpush3.bf16.msra.mxu1 %v634_v56 }
  0x5b   :  { %636 = vmatprep.subr.bf16.mxu1 %v792_v2 }
  0x5e   :  { %638 = vmatpush3.bf16.msra.mxu1 %v637_v21 }
  0xb8   :  { %v87_v58 = vpop.permute.xlu1 %86  ;;  %v73_v59 = vpop.permute.xlu0 %72 }
  0xb9   :  { %vm74_vm1 = vcmp.eq.s32.totalorder %v73_v59, %v70_v60  ;;  %vm88_vm2 = vcmp.eq.s32.totalorder %v87_v58, %v70_v60 }
  0xba   :  { %v425_v63 = vsel %vm74_vm1, 1.0, %v800_v33  ;;  %v427_v3 = vsel %vm88_vm2, 1.0, %v800_v33 }
  0xbd   :  { %v94_v61 = vpop.permute.xlu1 %93  ;;  %v80_v62 = vpop.permute.xlu0 %79 }
  0xbe   :  { %vm81_vm3 = vcmp.eq.s32.totalorder %v80_v62, %v70_v60  ;;  %vm95_vm4 = vcmp.eq.s32.totalorder %v94_v61, %v70_v60 }
  0xbf   :  { %v426_v0 = vsel %vm81_vm3, 1.0, %v800_v33  ;;  %v428_v7 = vsel %vm95_vm4, 1.0, %v800_v33 }
  0xc0   :  { %v84_v1 = vadd.f32 %v426_v0, %v425_v63 }
  0xc2   :  { %v91_v4 = vadd.f32 %v427_v3, %v84_v1  ;;  %v101_v5 = vpop.permute.xlu1 %100  ;;  %v108_v6 = vpop.permute.xlu0 %107 }
  0xc3   :  { %vm102_vm5 = vcmp.eq.s32.totalorder %v101_v5, %v70_v60  ;;  %vm109_vm6 = vcmp.eq.s32.totalorder %v108_v6, %v70_v60 }
  0xc4   :  { %v98_v8 = vadd.f32 %v428_v7, %v91_v4  ;;  %v429_v9 = vsel %vm102_vm5, 1.0, %v800_v33  ;;  %v430_v11 = vsel %vm109_vm6, 1.0, %v800_v33 }
  0xc6   :  { %v105_v10 = vadd.f32 %v429_v9, %v98_v8 }
  0xc7   :  { %v115_v12 = vpop.permute.xlu1 %114 }
  0xc8   :  { %vm116_vm7 = vcmp.eq.s32.totalorder %v115_v12, %v70_v60  ;;  %v112_v13 = vadd.f32 %v430_v11, %v105_v10  ;;  %v217_v43 = vpop.permute.xlu0 %216 }
  0xc9   :  { %v431_v14 = vsel %vm116_vm7, 1.0, %v800_v33  ;;  %689 = vrcp.f32 %v217_v43 }
  0xca   :  { %v119_v16 = vadd.f32 %v431_v14, %v112_v13 }
  0xcc   :  { %v122_v15 = vpop.permute.xlu1 %121 }
  0xcd   :  { %vm123_vm8 = vcmp.eq.s32.totalorder %v122_v15, %v70_v60 }
  0xce   :  { %v432_v17 = vsel %vm123_vm8, 1.0, %v800_v33 }
  0xcf   :  { %v126_v18 = vadd.f32 %v432_v17, %v119_v16 }
  0xd1   :  { %519 = vmatmul.mubr.f32.vlgmr.msra.gmra.mrb[0].mxu0 %v126_v18 }
  0xd2   :  { %588 = vmatprep.mubr.msk.f32.mxu0 %vm799_vm0, %v800_v33  ;;  %641 = vmatpush3.bf16.msra.mxu0 %v640_v25  ;;  %v649_v33 = vpack.c.bf16 %v322_v32, %v321_v31 }
  0xd3   :  { %642 = vmatprep.subr.bf16.mxu0 %v792_v2  ;;  %v690_v44 = vpop.eup %689 }
  0xd6   :  { %644 = vmatpush3.bf16.msra.mxu0 %v643_v27 }
  0xd7   :  { %645 = vmatprep.subr.bf16.mxu0 %v792_v2 }
  0xda   :  { %647 = vmatpush3.bf16.msra.mxu0 %v646_v30 }
  0xdb   :  { %648 = vmatprep.subr.bf16.mxu0 %v792_v2 }
  0xde   :  { %650 = vmatpush3.bf16.msra.mxu0 %v649_v33 }
  0xdf   :  { %651 = vmatprep.subr.bf16.mxu0 %v792_v2 }
  0xe2   :  { %653 = vmatpush3.bf16.msra.mxu0 %v652_v36 }
  0xe3   :  { %654 = vmatprep.subr.bf16.mxu0 %v792_v2 }
  0xe6   :  { %656 = vmatpush3.bf16.msra.mxu0 %v655_v39 }
  0xe7   :  { %657 = vmatprep.subr.bf16.mxu0 %v792_v2 }
  0xea   :  { %659 = vmatpush3.bf16.msra.mxu0 %v658_v42 }
  0xeb   :  { %660 = vmatprep.subr.bf16.mxu0 %v792_v2  ;;  %v434_v2 = vld [vmem:[%s962_s6] ss:$0 sm:$0xff] }
  0xee   :  { %662 = vmatpush3.bf16.msra.mxu0 %v661_v50 }
 0x1a4   :  { %v209_v45 = vpop.f32.mrb[0].mxu0 }
 0x1a5   :  { %v220_v46 = vmul.f32 %v690_v44, %v209_v45  ;;  %v520_v47 = vpop.f32.mrb[1].mxu0 }
 0x1a7   :  { %554 = vmatmul.mubr.f32.vlgmr.msra.gmra.mrb[0].mxu1 %v220_v46 }
 0x27a   :  { %v310_v52 = vpop.f32.mrb[0].mxu1 }
 0x27b   :  { %v311_v53 = vadd.f32 %v433_v51, %v310_v52  ;;  %v555_v54 = vpop.f32.mrb[1].mxu1 }
 0x27d   :  { %v314_v55 = vmax.f32 %v311_v53, 0.0 }
 0x27f   :  { %589 = vmatmul.mubr.f32.vlgmr.msra.gmra.mrb[2].mxu0 %v314_v55 }
 0x352   :  { %v404_v56 = vpop.f32.mrb[2].mxu0 }
 0x353   :  { %v405_v57 = vadd.f32 %v434_v2, %v404_v56  ;;  %v590_v58 = vpop.f32.mrb[3].mxu0 }
 0x355   :  { %408 = vst [vmem:[#allocation8] sm:$0xff] %v405_v57 }
 0x356   :  { %768 = shalt.err (!%p765_p0)
}
 0x357   :  { %s769_s23 = scalar_lea.hbm %s963_s7, 128 }
 0x358   :  { %p770_p1 = scmp.ne.s32.totalorder %s963_s7, %s769_s23  ;;  %p773_p2 = scmp.lt.u32.totalorder %s769_s23, %s963_s7 }
 0x35a   :  { %p775_p3 = pnand %p773_p2, %p770_p1 }
 0x35c   :  { %778 = shalt.err (!%p775_p3)
}
 0x35d   :  { %418 = dma.vmem_to_hbm [thread:$0]  %s416_s20, 128, %s963_s7, [#allocation4]  }
 0x35e   :  { %783 = dma.done.wait [#allocation4], 128  }
 0x35f   :  { %784 = vsyncadd [#allocation4], 4294967168 }
 0x360   :  { %422 = vsyncpa [#allocation3], 1 }
 0x361   :  { %423 = vsyncpa [#allocation6], 1 }
 0x362   :  { %424 = vsyncpa [#allocation4], 1 }

</bundles_post_ra>
